<compile_context>
chip_gen: v6e
topology: v6e:2x2x1
jax: 0.10.0
libtpu: 0.0.40
codegen_flags: <defaults>
</compile_context>

<pallas_src>
import numpy as np
import jax
import jax.numpy as jnp
from jax.experimental import pallas as pl
from jax.experimental.pallas import tpu as pltpu


# ----------------------------------------------------------------------------
# Kernel 1: lane-dense Mahalanobis distance
#   dist[b, p] = sqrt(max(sum_{i,j} delta[b,i,p] * icov[i,j,p] * delta[b,j,p], 0))
# ----------------------------------------------------------------------------
def _mahalanobis_kernel(emb_ref, mean_ref, icov_ref, out_ref):
    # emb_ref : (B, C, TP)   mean_ref : (C, TP)   icov_ref : (C*C, TP)
    # out_ref : (B, TP)      -- TP (positions) on the 128-wide lane axis.
    c = mean_ref.shape[0]
    emb = emb_ref[...]                    # (B, C, TP)
    mean = mean_ref[...]                  # (C, TP)
    icov = icov_ref[...]                  # (C*C, TP)

    # Per-channel deltas, each (B, TP): lane-dense, broadcast over sublanes only.
    delta = [emb[:, i, :] - mean[i:i + 1, :] for i in range(c)]

    # Unrolled quadratic form (C is small here).  For production PaDiM channel
    # counts (C >= ~100) this loop should be replaced by a batched dot_general
    # that lowers to the MXU; for small C the unrolled VPU form avoids both the
    # (TP,B,C,C) broadcast intermediate and any cross-lane reduction.
    acc = jnp.zeros(out_ref.shape, jnp.float32)
    for i in range(c):
        ti = jnp.zeros(out_ref.shape, jnp.float32)
        for j in range(c):
            ti = ti + icov[i * c + j:i * c + j + 1, :] * delta[j]
        acc = acc + ti * delta[i]

    out_ref[...] = jnp.sqrt(jnp.maximum(acc, 0.0))


def _pick_tile_p(hw, c, b):
    """Lane-dense HW tile: multiple of 128, divides HW, keeps >= 2 parallel grid
    steps when possible, and keeps double-buffered blocks well under the scoped
    VMEM limit (conservative for v7x's 64 MiB physical / 32 MiB default)."""
    if hw % 128 != 0:
        return hw                                  # small maps: one full block
    budget = 8 * 1024 * 1024                       # bytes for all 2x-buffered blocks
    per_pos = 2 * 4 * (c * c + b * c + c + b)      # f32 bytes per HW position
    max_by_vmem = max(128, (budget // per_pos) // 128 * 128)
    tile = 128
    while (tile * 2 <= max_by_vmem
           and hw % (tile * 2) == 0
           and hw // (tile * 2) >= 2):
        tile *= 2
    return tile


def mahalanobis_distance(embedding, mean, inv_covariance):
    """embedding: (B, C, H, W); mean: (C, H*W); inv_covariance: (H*W, C, C).
    Returns clamp(0).sqrt() Mahalanobis distances, shape (B, 1, H, W)."""
    b, c, h, w = embedding.shape
    hw = h * w

    emb = embedding.reshape(b, c, hw).astype(jnp.float32)          # free reshape
    mean_f = mean.astype(jnp.float32)                              # already (C, HW)
    icov = jnp.transpose(inv_covariance.astype(jnp.float32),
                         (1, 2, 0)).reshape(c * c, hw)             # (C*C, HW)

    tile_p = _pick_tile_p(hw, c, b)
    grid = (hw // tile_p,)

    out = pl.pallas_call(
        _mahalanobis_kernel,
        out_shape=jax.ShapeDtypeStruct((b, hw), jnp.float32),
        grid=grid,
        in_specs=[
            pl.BlockSpec((b, c, tile_p), lambda p: (0, 0, p)),
            pl.BlockSpec((c, tile_p), lambda p: (0, p)),
            pl.BlockSpec((c * c, tile_p), lambda p: (0, p)),
        ],
        out_specs=pl.BlockSpec((b, tile_p), lambda p: (0, p)),
        compiler_params=pltpu.CompilerParams(
            dimension_semantics=("parallel",),
            vmem_limit_bytes=32 * 1024 * 1024,
        ),
    )(emb, mean_f, icov)
    return out.reshape(b, 1, h, w)


# ----------------------------------------------------------------------------
# Kernel 2: fused (bilinear-resize o Gaussian-blur) as one row/col matmul pass
#   out[b] = R @ x[b] @ C^T,   R = G_r @ W_r,   C = G_c @ W_c  (built on host)
# ----------------------------------------------------------------------------
def _resize_blur_kernel(x_ref, rmat_ref, cmat_t_ref, out_ref):
    # x_ref      : (B*H_in, W_in)  -- batch stacked along M
    # rmat_ref   : (H_out, H_in)
    # cmat_t_ref : (W_in, W_out)
    # out_ref    : (B, H_out, W_out)
    b = out_ref.shape[0]
    h_in = rmat_ref.shape[1]
    rmat = rmat_ref[...]
    # Column pass for the whole batch in one MXU matmul (taller M = B*H_in).
    y = jnp.dot(x_ref[...], cmat_t_ref[...],
                preferred_element_type=jnp.float32)                # (B*H_in, W_out)
    # Row pass, unrolled over the (small) batch.
    for i in range(b):
        out_ref[i] = jnp.dot(rmat, y[i * h_in:(i + 1) * h_in, :],
                             preferred_element_type=jnp.float32)   # (H_out, W_out)


def resize_and_blur(score_map, rmat, cmat_t):
    """score_map: (B, 1, H_in, W_in); rmat: (H_out, H_in); cmat_t: (W_in, W_out)."""
    b, _, h_in, w_in = score_map.shape
    h_out, w_out = rmat.shape[0], cmat_t.shape[1]
    x2 = score_map.reshape(b * h_in, w_in).astype(jnp.float32)     # free reshape
    out = pl.pallas_call(
        _resize_blur_kernel,
        out_shape=jax.ShapeDtypeStruct((b, h_out, w_out), jnp.float32),
    )(x2, rmat, cmat_t)
    return out[:, None, :, :]


# ----------------------------------------------------------------------------
# Host-side (numpy) matrix construction: interpolation / blur as matrices
# ----------------------------------------------------------------------------
def bilinear_resize_matrix(n_out, n_in):
    """F.interpolate(mode='bilinear', align_corners=False) along one axis."""
    m = np.zeros((n_out, n_in), dtype=np.float32)
    scale = n_in / n_out
    for o in range(n_out):
        src = max((o + 0.5) * scale - 0.5, 0.0)
        i0 = min(int(np.floor(src)), n_in - 1)
        i1 = min(i0 + 1, n_in - 1)
        frac = src - i0
        m[o, i0] += 1.0 - frac
        m[o, i1] += frac
    return m


def gaussian_kernel_1d(kernel_size, sigma):
    x = np.arange(kernel_size, dtype=np.float64) - kernel_size // 2
    g = np.exp(-(x ** 2) / (2.0 * sigma ** 2))
    return (g / g.sum()).astype(np.float32)


def reflect_conv_matrix(n, kernel_1d):
    """1D correlation with 'reflect' padding (PyTorch F.pad, pad < n) as a dense matrix."""
    k = kernel_1d.shape[0]
    pad = (k - 1) // 2
    assert pad < n, "reflect padding requires pad < spatial size (same as PyTorch)"
    m = np.zeros((n, n), dtype=np.float32)
    for i in range(n):
        for t in range(k):
            j = i - pad + t
            if j < 0:
                j = -j
            elif j > n - 1:
                j = 2 * (n - 1) - j
            m[i, j] += kernel_1d[t]
    return m


def build_combined_matrices(h_in, w_in, image_size, kernel_1d):
    """Fuse (optional) bilinear up-sample and Gaussian blur into single row/col
    matrices:  R = G_r @ W_r  (H_out x H_in),  C = G_c @ W_c  (W_out x W_in)."""
    if image_size is not None:
        h_out, w_out = int(image_size[0]), int(image_size[1])
        wr = bilinear_resize_matrix(h_out, h_in)
        wc = bilinear_resize_matrix(w_out, w_in)
    else:
        h_out, w_out = h_in, w_in
        wr = np.eye(h_in, dtype=np.float32)
        wc = np.eye(w_in, dtype=np.float32)
    gr = reflect_conv_matrix(h_out, kernel_1d)
    gc = reflect_conv_matrix(w_out, kernel_1d)
    rmat = (gr @ wr).astype(np.float32)        # (H_out, H_in)
    cmat = (gc @ wc).astype(np.float32)        # (W_out, W_in)
    return rmat, cmat


# ----------------------------------------------------------------------------
# Module equivalent
# ----------------------------------------------------------------------------
class AnomalyMapGenerator:
    def __init__(self, sigma: int = 4):
        kernel_size = 2 * int(4.0 * sigma + 0.5) + 1        # 33 for sigma=4
        self.kernel_1d = gaussian_kernel_1d(kernel_size, float(sigma))
        self._mat_cache = {}

    def _matrices(self, h_in, w_in, image_size):
        key = (h_in, w_in, None if image_size is None else tuple(image_size))
        if key not in self._mat_cache:
            rmat, cmat = build_combined_matrices(h_in, w_in, image_size, self.kernel_1d)
            self._mat_cache[key] = (jnp.asarray(rmat), jnp.asarray(cmat.T))
        return self._mat_cache[key]

    def __call__(self, *, embedding, mean, inv_covariance, image_size=None):
        # Mahalanobis distance -> (B, 1, H, W), already clamp(0).sqrt()
        score_map = mahalanobis_distance(embedding, mean, inv_covariance)
        b, _, h, w = score_map.shape
        # Single fused resize+blur pass (one pallas_call, whole batch per step).
        rmat, cmat_t = self._matrices(h, w, image_size)
        return resize_and_blur(score_map, rmat, cmat_t)      # (B, 1, H_out, W_out)


if __name__ == "__main__":
    key = jax.random.PRNGKey(0)
    B, C, H, W = 2, 4, 16, 16
    IMAGE_SIZE = (64, 64)

    k1, k2, k3 = jax.random.split(key, 3)
    embedding = jax.random.normal(k1, (B, C, H, W), dtype=jnp.float32)
    mean = jax.random.normal(k2, (C, H * W), dtype=jnp.float32)
    a = jax.random.normal(k3, (H * W, C, C), dtype=jnp.float32)
    # deterministic SPD inverse-covariance per spatial position
    inv_covariance = jnp.einsum("pij,pkj->pik", a, a) + 0.1 * jnp.eye(C, dtype=jnp.float32)[None]

    generator = AnomalyMapGenerator(sigma=4)
    anomaly_map = generator(embedding=embedding, mean=mean,
                            inv_covariance=inv_covariance, image_size=IMAGE_SIZE)
    anomaly_map = jax.block_until_ready(anomaly_map)
    assert anomaly_map.shape == (B, 1, *IMAGE_SIZE)
    assert anomaly_map.dtype == jnp.float32
    print("KERNEL_OK")
</pallas_src>

<mosaic_0001>
module attributes {stable_mosaic.version = 11 : i64} {
  func.func @_mahalanobis_kernel(%arg0: i32, %arg1: memref<2x4x128xf32, #tpu.memory_space<vmem>>, %arg2: memref<4x128xf32, #tpu.memory_space<vmem>>, %arg3: memref<16x128xf32, #tpu.memory_space<vmem>>, %arg4: memref<2x128xf32, #tpu.memory_space<vmem>>) attributes {dimension_semantics = [#tpu.dimension_semantics<parallel>], iteration_bounds = array<i64: 2>, scalar_prefetch = 0 : i64, scratch_operands = 0 : i64, tpu.core_type = #tpu.core_type<tc>, window_params = [{transform_indices = @transform_0, window_bounds = array<i64: 2, 4, 128>}, {transform_indices = @transform_1, window_bounds = array<i64: 4, 128>}, {transform_indices = @transform_2, window_bounds = array<i64: 16, 128>}, {transform_indices = @transform_3, window_bounds = array<i64: 2, 128>}]} {
    %c0 = arith.constant 0 : index
    %c0_0 = arith.constant 0 : index
    %c0_1 = arith.constant 0 : index
    %0 = vector.load %arg1[%c0, %c0_0, %c0_1] : memref<2x4x128xf32, #tpu.memory_space<vmem>>, vector<2x4x128xf32>
    %c0_2 = arith.constant 0 : index
    %c0_3 = arith.constant 0 : index
    %1 = vector.load %arg2[%c0_2, %c0_3] : memref<4x128xf32, #tpu.memory_space<vmem>>, vector<4x128xf32>
    %c0_4 = arith.constant 0 : index
    %c0_5 = arith.constant 0 : index
    %2 = vector.load %arg3[%c0_4, %c0_5] : memref<16x128xf32, #tpu.memory_space<vmem>>, vector<16x128xf32>
    %3 = vector.extract_strided_slice %0 {offsets = [0, 0, 0], sizes = [2, 1, 128], strides = [1, 1, 1]} : vector<2x4x128xf32> to vector<2x1x128xf32>
    %4 = vector.shape_cast %3 : vector<2x1x128xf32> to vector<2x128xf32>
    %5 = vector.extract_strided_slice %1 {offsets = [0, 0], sizes = [1, 128], strides = [1, 1]} : vector<4x128xf32> to vector<1x128xf32>
    %6 = vector.broadcast %5 : vector<1x128xf32> to vector<2x128xf32>
    %7 = arith.subf %4, %6 : vector<2x128xf32>
    %8 = vector.extract_strided_slice %0 {offsets = [0, 1, 0], sizes = [2, 1, 128], strides = [1, 1, 1]} : vector<2x4x128xf32> to vector<2x1x128xf32>
    %9 = vector.shape_cast %8 : vector<2x1x128xf32> to vector<2x128xf32>
    %10 = vector.extract_strided_slice %1 {offsets = [1, 0], sizes = [1, 128], strides = [1, 1]} : vector<4x128xf32> to vector<1x128xf32>
    %11 = vector.broadcast %10 : vector<1x128xf32> to vector<2x128xf32>
    %12 = arith.subf %9, %11 : vector<2x128xf32>
    %13 = vector.extract_strided_slice %0 {offsets = [0, 2, 0], sizes = [2, 1, 128], strides = [1, 1, 1]} : vector<2x4x128xf32> to vector<2x1x128xf32>
    %14 = vector.shape_cast %13 : vector<2x1x128xf32> to vector<2x128xf32>
    %15 = vector.extract_strided_slice %1 {offsets = [2, 0], sizes = [1, 128], strides = [1, 1]} : vector<4x128xf32> to vector<1x128xf32>
    %16 = vector.broadcast %15 : vector<1x128xf32> to vector<2x128xf32>
    %17 = arith.subf %14, %16 : vector<2x128xf32>
    %18 = vector.extract_strided_slice %0 {offsets = [0, 3, 0], sizes = [2, 1, 128], strides = [1, 1, 1]} : vector<2x4x128xf32> to vector<2x1x128xf32>
    %19 = vector.shape_cast %18 : vector<2x1x128xf32> to vector<2x128xf32>
    %20 = vector.extract_strided_slice %1 {offsets = [3, 0], sizes = [1, 128], strides = [1, 1]} : vector<4x128xf32> to vector<1x128xf32>
    %21 = vector.broadcast %20 : vector<1x128xf32> to vector<2x128xf32>
    %22 = arith.subf %19, %21 : vector<2x128xf32>
    %cst = arith.constant 0.000000e+00 : f32
    %23 = vector.broadcast %cst : f32 to vector<2x128xf32>
    %cst_6 = arith.constant 0.000000e+00 : f32
    %24 = vector.broadcast %cst_6 : f32 to vector<2x128xf32>
    %25 = vector.extract_strided_slice %2 {offsets = [0, 0], sizes = [1, 128], strides = [1, 1]} : vector<16x128xf32> to vector<1x128xf32>
    %26 = vector.broadcast %25 : vector<1x128xf32> to vector<2x128xf32>
    %27 = arith.mulf %26, %7 : vector<2x128xf32>
    %28 = arith.addf %24, %27 : vector<2x128xf32>
    %29 = vector.extract_strided_slice %2 {offsets = [1, 0], sizes = [1, 128], strides = [1, 1]} : vector<16x128xf32> to vector<1x128xf32>
    %30 = vector.broadcast %29 : vector<1x128xf32> to vector<2x128xf32>
    %31 = arith.mulf %30, %12 : vector<2x128xf32>
    %32 = arith.addf %28, %31 : vector<2x128xf32>
    %33 = vector.extract_strided_slice %2 {offsets = [2, 0], sizes = [1, 128], strides = [1, 1]} : vector<16x128xf32> to vector<1x128xf32>
    %34 = vector.broadcast %33 : vector<1x128xf32> to vector<2x128xf32>
    %35 = arith.mulf %34, %17 : vector<2x128xf32>
    %36 = arith.addf %32, %35 : vector<2x128xf32>
    %37 = vector.extract_strided_slice %2 {offsets = [3, 0], sizes = [1, 128], strides = [1, 1]} : vector<16x128xf32> to vector<1x128xf32>
    %38 = vector.broadcast %37 : vector<1x128xf32> to vector<2x128xf32>
    %39 = arith.mulf %38, %22 : vector<2x128xf32>
    %40 = arith.addf %36, %39 : vector<2x128xf32>
    %41 = arith.mulf %40, %7 : vector<2x128xf32>
    %42 = arith.addf %23, %41 : vector<2x128xf32>
    %cst_7 = arith.constant 0.000000e+00 : f32
    %43 = vector.broadcast %cst_7 : f32 to vector<2x128xf32>
    %44 = vector.extract_strided_slice %2 {offsets = [4, 0], sizes = [1, 128], strides = [1, 1]} : vector<16x128xf32> to vector<1x128xf32>
    %45 = vector.broadcast %44 : vector<1x128xf32> to vector<2x128xf32>
    %46 = arith.mulf %45, %7 : vector<2x128xf32>
    %47 = arith.addf %43, %46 : vector<2x128xf32>
    %48 = vector.extract_strided_slice %2 {offsets = [5, 0], sizes = [1, 128], strides = [1, 1]} : vector<16x128xf32> to vector<1x128xf32>
    %49 = vector.broadcast %48 : vector<1x128xf32> to vector<2x128xf32>
    %50 = arith.mulf %49, %12 : vector<2x128xf32>
    %51 = arith.addf %47, %50 : vector<2x128xf32>
    %52 = vector.extract_strided_slice %2 {offsets = [6, 0], sizes = [1, 128], strides = [1, 1]} : vector<16x128xf32> to vector<1x128xf32>
    %53 = vector.broadcast %52 : vector<1x128xf32> to vector<2x128xf32>
    %54 = arith.mulf %53, %17 : vector<2x128xf32>
    %55 = arith.addf %51, %54 : vector<2x128xf32>
    %56 = vector.extract_strided_slice %2 {offsets = [7, 0], sizes = [1, 128], strides = [1, 1]} : vector<16x128xf32> to vector<1x128xf32>
    %57 = vector.broadcast %56 : vector<1x128xf32> to vector<2x128xf32>
    %58 = arith.mulf %57, %22 : vector<2x128xf32>
    %59 = arith.addf %55, %58 : vector<2x128xf32>
    %60 = arith.mulf %59, %12 : vector<2x128xf32>
    %61 = arith.addf %42, %60 : vector<2x128xf32>
    %cst_8 = arith.constant 0.000000e+00 : f32
    %62 = vector.broadcast %cst_8 : f32 to vector<2x128xf32>
    %63 = vector.extract_strided_slice %2 {offsets = [8, 0], sizes = [1, 128], strides = [1, 1]} : vector<16x128xf32> to vector<1x128xf32>
    %64 = vector.broadcast %63 : vector<1x128xf32> to vector<2x128xf32>
    %65 = arith.mulf %64, %7 : vector<2x128xf32>
    %66 = arith.addf %62, %65 : vector<2x128xf32>
    %67 = vector.extract_strided_slice %2 {offsets = [9, 0], sizes = [1, 128], strides = [1, 1]} : vector<16x128xf32> to vector<1x128xf32>
    %68 = vector.broadcast %67 : vector<1x128xf32> to vector<2x128xf32>
    %69 = arith.mulf %68, %12 : vector<2x128xf32>
    %70 = arith.addf %66, %69 : vector<2x128xf32>
    %71 = vector.extract_strided_slice %2 {offsets = [10, 0], sizes = [1, 128], strides = [1, 1]} : vector<16x128xf32> to vector<1x128xf32>
    %72 = vector.broadcast %71 : vector<1x128xf32> to vector<2x128xf32>
    %73 = arith.mulf %72, %17 : vector<2x128xf32>
    %74 = arith.addf %70, %73 : vector<2x128xf32>
    %75 = vector.extract_strided_slice %2 {offsets = [11, 0], sizes = [1, 128], strides = [1, 1]} : vector<16x128xf32> to vector<1x128xf32>
    %76 = vector.broadcast %75 : vector<1x128xf32> to vector<2x128xf32>
    %77 = arith.mulf %76, %22 : vector<2x128xf32>
    %78 = arith.addf %74, %77 : vector<2x128xf32>
    %79 = arith.mulf %78, %17 : vector<2x128xf32>
    %80 = arith.addf %61, %79 : vector<2x128xf32>
    %cst_9 = arith.constant 0.000000e+00 : f32
    %81 = vector.broadcast %cst_9 : f32 to vector<2x128xf32>
    %82 = vector.extract_strided_slice %2 {offsets = [12, 0], sizes = [1, 128], strides = [1, 1]} : vector<16x128xf32> to vector<1x128xf32>
    %83 = vector.broadcast %82 : vector<1x128xf32> to vector<2x128xf32>
    %84 = arith.mulf %83, %7 : vector<2x128xf32>
    %85 = arith.addf %81, %84 : vector<2x128xf32>
    %86 = vector.extract_strided_slice %2 {offsets = [13, 0], sizes = [1, 128], strides = [1, 1]} : vector<16x128xf32> to vector<1x128xf32>
    %87 = vector.broadcast %86 : vector<1x128xf32> to vector<2x128xf32>
    %88 = arith.mulf %87, %12 : vector<2x128xf32>
    %89 = arith.addf %85, %88 : vector<2x128xf32>
    %90 = vector.extract_strided_slice %2 {offsets = [14, 0], sizes = [1, 128], strides = [1, 1]} : vector<16x128xf32> to vector<1x128xf32>
    %91 = vector.broadcast %90 : vector<1x128xf32> to vector<2x128xf32>
    %92 = arith.mulf %91, %17 : vector<2x128xf32>
    %93 = arith.addf %89, %92 : vector<2x128xf32>
    %94 = vector.extract_strided_slice %2 {offsets = [15, 0], sizes = [1, 128], strides = [1, 1]} : vector<16x128xf32> to vector<1x128xf32>
    %95 = vector.broadcast %94 : vector<1x128xf32> to vector<2x128xf32>
    %96 = arith.mulf %95, %22 : vector<2x128xf32>
    %97 = arith.addf %93, %96 : vector<2x128xf32>
    %98 = arith.mulf %97, %22 : vector<2x128xf32>
    %99 = arith.addf %80, %98 : vector<2x128xf32>
    %cst_10 = arith.constant 0.000000e+00 : f32
    %100 = vector.broadcast %cst_10 : f32 to vector<2x128xf32>
    %101 = arith.maximumf %99, %100 : vector<2x128xf32>
    %102 = math.sqrt %101 : vector<2x128xf32>
    %c0_11 = arith.constant 0 : index
    %c0_12 = arith.constant 0 : index
    %103 = vector.load %arg4[%c0_11, %c0_12] : memref<2x128xf32, #tpu.memory_space<vmem>>, vector<2x128xf32>
    tpu.vector_store %arg4[%c0_11, %c0_12], %102 {strides = array<i32>} : memref<2x128xf32, #tpu.memory_space<vmem>>, vector<2x128xf32>,
    return
  }
  func.func @transform_0(%arg0: i32) -> (i32, i32, i32) {
    %c0_i32 = arith.constant 0 : i32
    %c0_i32_0 = arith.constant 0 : i32
    %c0_i32_1 = arith.constant 0 : i32
    return %c0_i32, %c0_i32_0, %arg0 : i32, i32, i32
  }
  func.func @transform_1(%arg0: i32) -> (i32, i32) {
    %c0_i32 = arith.constant 0 : i32
    %c0_i32_0 = arith.constant 0 : i32
    return %c0_i32, %arg0 : i32, i32
  }
  func.func @transform_2(%arg0: i32) -> (i32, i32) {
    %c0_i32 = arith.constant 0 : i32
    %c0_i32_0 = arith.constant 0 : i32
    return %c0_i32, %arg0 : i32, i32
  }
  func.func @transform_3(%arg0: i32) -> (i32, i32) {
    %c0_i32 = arith.constant 0 : i32
    %c0_i32_0 = arith.constant 0 : i32
    return %c0_i32, %arg0 : i32, i32
  }
}

</mosaic_0001>

<bundles_post_ra>
// kernel: tpu_custom_call.1
= control target key start
LH: loop header
LB: loop body
LE: loop exit
PB: predicated region body
PF: predicated region fallthrough
CT: control target
= control target key end

     0   :  { %s1077_s0 = inlined_call_operand.hbm [shape: f32[2,4,256], index: 0, kind: input, shape index: {}]   ;;  %s1078_s1 = inlined_call_operand.hbm [shape: f32[4,256], index: 1, kind: input, shape index: {}]   ;;  %s1079_s2 = inlined_call_operand.hbm [shape: f32[16,256], index: 2, kind: input, shape index: {}]   ;;  %s1080_s3 = inlined_call_operand.hbm [shape: f32[2,256], index: 3, kind: output, shape index: {}]  }
   0x1   :  { %1083 = sst [smem:[#allocation13_spill]] %s1077_s0 }
   0x2   :  { %1084 = sst [smem:[#allocation14_spill]] %s1078_s1 }
   0x3   :  { %8 = vsyncpa [#allocation3], 0 }
   0x4   :  { %10 = vsyncpa [#allocation3 + $0x1], 0 }
   0x5   :  { %11 = vsyncpa [#allocation6], 0 }
   0x6   :  { %13 = vsyncpa [#allocation6 + $0x1], 0 }
   0x7   :  { %14 = vsyncpa [#allocation4], 0 }
   0x8   :  { %16 = vsyncpa [#allocation4 + $0x1], 0  ;;  %s817_s12 = smov 0   ;;  %s819_s13 = smov 0  }
   0x9   :  { %s821_s14 = smov 0   ;;  %s823_s15 = smov 0  }
   0xa LB: > { %s838_s16 = sadd.s32 4294967295, %s786_s15   ;;  %s553_s17 = sadd.s32 4294967294, %s786_s15   ;;  %s786_s15 = sphi %s823_s15, %s1104_s15   ;;  %s782_s14 = sphi %s821_s14, %s1103_s14   ;;  %s778_s13 = sphi %s819_s13, %s1102_s13   ;;  %s774_s12 = sphi %s817_s12, %s1101_s12  }
   0xb   : > { %s842_s18 = sadd.s32 1, %s786_s15   ;;  %s29_s19 = sadd.s32 1, %s782_s14 }
   0xc   : > { %s26_s20 = ssub.s32 %s786_s15, %s842_s18  ;;  %p36_p0 = scmp.ne.s32.totalorder %s782_s14, %s778_s13 }
   0xd   : > { %p27_p1 = scmp.eq.s32.totalorder %s26_s20, 0  ;;  %p37_p2 = scmp.eq.s32.totalorder %s786_s15, 0 }
   0xe   : > { %p42_p3 = scmp.ne.s32.totalorder %s778_s13, %s774_s12  ;;  %p43_p4 = scmp.eq.s32.totalorder %s838_s16, 0 }
   0xf   : > { %s854_s21 = scalar_select %p27_p1, %s782_s14, %s29_s19  }
  0x10   : > { %p38_p5 = por %p37_p2, %p36_p0  ;;  %p856_p6 = por %p43_p4, %p42_p3 }
  0x11   : > { %1085 = sst [smem:[#allocation12_spill]] %s854_s21  ;;  %p118_p7 = scmp.eq.s32.totalorder %s838_s16, 1 }
  0x12   : > { %s1086_s22 = scalar_select %p856_p6, 1, 0 }
  0x13   : > { %p124_p8 = scmp.eq.s32.totalorder %s553_s17, 1  ;;  %p593_p10 = scmp.lt.s32.totalorder %s786_s15, 2 }
  0x14   : > { %p863_p11 = por %p118_p7, %p36_p0  ;;  %s872_s25 = sand.u32 1, %s782_s14  }
  0x15   : > { %p867_p12 = por %p124_p8, %p42_p3  ;;  %s557_s26 = sshll.u32 %s786_s15, 6 }
  0x16   : > { %s1087_s23 = scalar_select %p863_p11, 1, 0 }
  0x17   : > { %s1088_s24 = scalar_select %p867_p12, 1, 0 }
  0x18   : > { %s1089_s0 = sld [smem:[#allocation13_spill]]  ;;  %p881_p13 = pnand %p593_p10, %p38_p5 }
  0x19   : > { %s164_s5 = sand.u32 1, %s786_s15   ;;  %s558_s6 = sshll.u32 %s872_s25, 2 }
  0x1a   : > { %s1091_s1 = sld [smem:[#allocation14_spill]]  ;;  %s168_s10 = scalar_lea.vmem [#allocation5], %s558_s6 }
  0x1b   : > { %s175_s11 = sshll.u32 %s168_s10, 4  ;;  %s560_s17 = sshll.u32 %s872_s25, 4  ;;  %s176_s11 = int_to_ptr.vmem [resolvable:$true] %s175_s11 }
  0x1c   : > { %s893_s19 = scalar_lea.sflag [#allocation6], %s164_s5  ;;  %p899_p1 = pneg %p881_p13 }
  0x1e   : > { %s879_s30 = scalar_lea.hbm %s1089_s0, %s557_s26 }
  0x20   : > { %s890_s9 = scalar_lea.hbm %s1091_s1, %s557_s26  ;;  %s639_s6 = scalar_lea.hbm %s1091_s1, 128 }
  0x21   : > { %s634_s20 = scalar_lea.hbm %s890_s9, 64  ;;  %p640_p4 = scmp.lt.s32.totalorder %s890_s9, %s1091_s1 }
  0x22   : > { %p635_p0 = scmp.ne.s32.totalorder %s890_s9, %s634_s20  ;;  %p641_p5 = scmp.lt.s32.totalorder %s639_s6, %s634_s20 }
  0x24   : > { %p637_p2 = pnand %p899_p1, %p635_p0  ;;  %p642_p7 = por %p641_p5, %p640_p4 }
  0x26   : > { %p638_p3 = pneg %p637_p2 }
  0x28   : > { %p643_p8 = pnand %p642_p7, %p638_p3 }
  0x2a   : > { %646 = shalt.err (!%p643_p8)
}
  0x2b   : > { %s647_s5 = scalar_lea.vmem %s176_s11, 64  ;;  %s788_s10 = smov [#allocation5]  }
  0x2c   : > { %p648_p10 = scmp.ne.s32.totalorder %s176_s11, %s647_s5  ;;  %s652_s27 = sshll.u32 %s788_s10, 4  ;;  %s653_s27 = int_to_ptr.vmem [resolvable:$false] %s652_s27 }
  0x2d   : > { %s654_s21 = scalar_lea.vmem %s653_s27, 128  ;;  %p655_p0 = scmp.lt.s32.totalorder %s176_s11, %s653_s27 }
  0x2e   : > { %p650_p9 = pnand %p648_p10, %p899_p1  ;;  %p656_p2 = scmp.lt.s32.totalorder %s654_s21, %s647_s5 }
  0x30   : > { %p651_p12 = pneg %p650_p9  ;;  %p657_p11 = por %p656_p2, %p655_p0 }
  0x32   : > { %p658_p6 = pnand %p657_p11, %p651_p12 }
  0x34   : > { %661 = shalt.err (!%p658_p6)
}
  0x35   : > { %585 = dma.hbm_to_vmem [thread:$0]  (!%p881_p13), %s890_s9, 64, %s176_s11, %s893_s19  }
  0x36   : > { %p562_p9 = scmp.ge.s32.totalorder %s786_s15, 1  ;;  %s186_s27 = scalar_lea.vmem [#allocation7], %s560_s17 }
  0x37   : > { %s192_s21 = sshll.u32 %s186_s27, 4  ;;  %p200_p3 = scmp.lt.s32.totalorder %s786_s15, 3  ;;  %s920_s21 = int_to_ptr.vmem [resolvable:$true] %s192_s21 }
  0x38   : > { %s1094_s26 = sshll.u32 %s872_s25, 3  ;;  %s561_s7 = sshll.u32 %s786_s15, 7 }
  0x39   : > { %p922_p6 = pnand %p562_p9, %p200_p3  ;;  %s148_s29 = scalar_lea.vmem [#allocation2], %s1094_s26 }
  0x3a   : > { %s154_s6 = sshll.u32 %s148_s29, 4  ;;  %s145_s8 = scalar_lea.sflag [#allocation3], %s872_s25  ;;  %s928_s6 = int_to_ptr.vmem [resolvable:$true] %s154_s6 }
  0x3b   : > { %s1093_s20 = scalar_select %p922_p6, 1, 0 }
  0x3c   : > { %s662_s5 = scalar_lea.hbm %s879_s30, 128  ;;  %s667_s17 = scalar_lea.hbm %s1089_s0, 256 }
  0x3d   : > { %p663_p11 = scmp.ne.s32.totalorder %s879_s30, %s662_s5  ;;  %p668_p5 = scmp.lt.s32.totalorder %s879_s30, %s1089_s0 }
  0x3e   : > { %p669_p7 = scmp.lt.s32.totalorder %s667_s17, %s662_s5 }
  0x3f   : > { %p665_p12 = pnand %p663_p11, %p899_p1 }
  0x40   : > { %p670_p8 = por %p669_p7, %p668_p5 }
  0x41   : > { %p666_p4 = pneg %p665_p12 }
  0x43   : > { %p671_p10 = pnand %p670_p8, %p666_p4 }
  0x45   : > { %674 = shalt.err (!%p671_p10)
}
  0x46   : > { %s675_s26 = scalar_lea.vmem %s928_s6, 128  ;;  %s789_s29 = smov [#allocation2]  }
  0x47   : > { %p676_p0 = scmp.ne.s32.totalorder %s928_s6, %s675_s26  ;;  %s680_s9 = sshll.u32 %s789_s29, 4  ;;  %s681_s9 = int_to_ptr.vmem [resolvable:$false] %s680_s9 }
  0x48   : > { %s682_s11 = scalar_lea.vmem %s681_s9, 256  ;;  %p683_p3 = scmp.lt.s32.totalorder %s928_s6, %s681_s9 }
  0x49   : > { %p678_p2 = pnand %p676_p0, %p899_p1  ;;  %p684_p11 = scmp.lt.s32.totalorder %s682_s11, %s675_s26 }
  0x4b   : > { %p679_p9 = pneg %p678_p2  ;;  %p685_p12 = por %p684_p11, %p683_p3 }
  0x4d   : > { %p686_p6 = pnand %p685_p12, %p679_p9 }
  0x4f   : > { %689 = shalt.err (!%p686_p6)
}
  0x50   : > { %s790_s5 = smov 128   ;;  %s791_s17 = smov 64  }
  0x51   : > { %s792_s10 = smov 4   ;;  %s960_s26 = scalar_lea.hbm %s1079_s2, %s561_s7 }
  0x52   : > { %582 = dma.hbm_to_vmem [thread:$0]  (!%p881_p13), %s879_s30, 128, %s928_s6, %s145_s8, %s790_s5, %s791_s17, %s792_s10  }
  0x53   : > { %s690_s9 = scalar_lea.hbm %s960_s26, 256  ;;  %s695_s1 = scalar_lea.hbm %s1079_s2, 512 }
  0x54   : > { %p691_p6 = scmp.ne.s32.totalorder %s960_s26, %s690_s9  ;;  %p696_p7 = scmp.lt.s32.totalorder %s960_s26, %s1079_s2 }
  0x55   : > { %p697_p8 = scmp.lt.s32.totalorder %s695_s1, %s690_s9 }
  0x56   : > { %p693_p4 = pnand %p691_p6, %p899_p1 }
  0x57   : > { %p698_p10 = por %p697_p8, %p696_p7 }
  0x58   : > { %p694_p5 = pneg %p693_p4 }
  0x5a   : > { %p699_p0 = pnand %p698_p10, %p694_p5 }
  0x5c   : > { %702 = shalt.err (!%p699_p0)
}
  0x5d   : > { %s703_s6 = scalar_lea.vmem %s920_s21, 256  ;;  %s793_s7 = smov [#allocation7]  }
  0x5e   : > { %p704_p2 = scmp.ne.s32.totalorder %s920_s21, %s703_s6  ;;  %s708_s0 = sshll.u32 %s793_s7, 4  ;;  %s709_s0 = int_to_ptr.vmem [resolvable:$false] %s708_s0 }
  0x5f   : > { %s710_s8 = scalar_lea.vmem %s709_s0, 512  ;;  %p711_p11 = scmp.lt.s32.totalorder %s920_s21, %s709_s0 }
  0x60   : > { %p706_p9 = pnand %p704_p2, %p899_p1  ;;  %p712_p12 = scmp.lt.s32.totalorder %s710_s8, %s703_s6 }
  0x62   : > { %p707_p3 = pneg %p706_p9  ;;  %p713_p6 = por %p712_p12, %p711_p11 }
  0x64   : > { %p714_p4 = pnand %p713_p6, %p707_p3 }
  0x66   : > { %717 = shalt.err (!%p714_p4)
}
  0x67   : > { %s794_s1 = smov 256   ;;  %s795_s17 = smov 8  }
  0x68   : > { %588 = dma.hbm_to_vmem [thread:$0]  (!%p881_p13), %s960_s26, 256, %s920_s21, %s893_s19, %s794_s1, %s790_s5, %s795_s17  }
  0x69   : > { %p1095_p1 = scmp.ne.s32.totalorder %s1093_s20, 0 }
  0x6a   : > { %s987_s28 = sand.u32 (!%p1095_p1), 1, %s778_s13   ;;  %p1096_p5 = scmp.ne.s32.totalorder (!%p1095_p1), %s1086_s22, 0 }
  0x6b   : > { %204 = sbr.rel (%p1095_p1) target bundleno = 181 (0xb5), region = 32  ;;  %s563_s10 = sshll.u32 (!%p1095_p1), %s987_s28, 3 }
  0x6c   : > { %s207_s27 = scalar_lea.sflag (!%p1095_p1), [#allocation3], %s987_s28  ;;  %s210_s29 = scalar_lea.vmem (!%p1095_p1), [#allocation2], %s563_s10 }
  0x70   : > { %761 = dma.done.wait (%p1096_p5), %s207_s27, 128  }
  0x71   : > { %763 = vsyncadd (%p1096_p5), %s207_s27, 4294967168  ;;  %s215_s4 = sand.u32 1, %s838_s16   ;;  %s564_s19 = sshll.u32 %s987_s28, 2 }
  0x72   : > { %s216_s21 = scalar_lea.sflag [#allocation6], %s215_s4  ;;  %s219_s20 = scalar_lea.vmem [#allocation5], %s564_s19 }
  0x73   : > { %765 = dma.done.wait (%p1096_p5), %s216_s21, 320  }
  0x74   : > { %767 = vsyncadd (%p1096_p5), %s216_s21, 4294966976  ;;  %v266_v0 = vlaneseq  ;;  %s565_s5 = sshll.u32 %s987_s28, 4  ;;  %vm297_vm0 = vcmask 1041409   ;;  %v261_v10 = vld [vmem:[%s210_s29] sm:$0xf]  ;;  %s566_s26 = sshll.u32 %s987_s28, 1 }
  0x75   : > { %v262_v11 = vld [vmem:[%s210_s29 + $0x4] sm:$0xf]  ;;  %v263_v12 = vld [vmem:[%s219_s20] sm:$0xf]  ;;  %s228_s22 = scalar_lea.vmem [#allocation7], %s565_s5  ;;  %s260_s9 = scalar_lea.vmem [#allocation8], %s566_s26 }
  0x76   : > { %v1002_v1 = vshrl.u32 %v266_v0, 7  ;;  %v264_v13 = vld [vmem:[%s228_s22] sm:$0xff]  ;;  %v265_v38 = vld [vmem:[%s228_s22 + $0x8] sm:$0xff]  ;;  %s440_s11 = sshll.u32 %s260_s9, 4  ;;  %s568_s25 = sshll.u32 %s838_s16, 5  ;;  %s1037_s11 = int_to_ptr.vmem [resolvable:$true] %s440_s11 }
  0x77   : > { %s438_s7 = scalar_lea.hbm %s1080_s3, %s568_s25  ;;  %s427_s0 = scalar_lea.sflag [#allocation4], %s987_s28 }
  0x78   : > { %v268_v2 = vsub.s32 0, %v1002_v1  ;;  %v1006_v3 = vsub.s32 1, %v1002_v1  ;;  %v1009_v4 = vsub.s32 2, %v1002_v1  ;;  %v1012_v5 = vsub.s32 3, %v1002_v1  ;;  %s718_s8 = scalar_lea.vmem %s1037_s11, 32  ;;  %p1097_p7 = scmp.ne.s32.totalorder %s1087_s23, 0 }
  0x79   : > { %v341_v6 = vsub.s32 4, %v1002_v1  ;;  %v347_v7 = vsub.s32 5, %v1002_v1  ;;  %v353_v8 = vsub.s32 6, %v1002_v1  ;;  %v359_v9 = vsub.s32 7, %v1002_v1  ;;  %p719_p13 = scmp.ne.s32.totalorder %s1037_s11, %s718_s8  ;;  %s796_s16 = smov [#allocation8]  }
  0x7a   : > { %v269_v14 = vrot.slane %v263_v12, %v268_v2  ;;  %v275_v15 = vrot.slane %v263_v12, %v1006_v3  ;;  %v281_v16 = vrot.slane %v263_v12, %v1009_v4  ;;  %v287_v17 = vrot.slane %v263_v12, %v1012_v5  ;;  %s722_s1 = sshll.u32 %s796_s16, 4  ;;  %s723_s1 = int_to_ptr.vmem [resolvable:$false] %s722_s1 }
  0x7b   : > { %v293_v18 = vrot.slane %v264_v13, %v268_v2  ;;  %v305_v19 = vrot.slane %v264_v13, %v1006_v3  ;;  %v316_v20 = vrot.slane %v264_v13, %v1009_v4  ;;  %v328_v21 = vrot.slane %v264_v13, %v1012_v5  ;;  %p720_p8 = pnand %p719_p13, %p1097_p7  ;;  %s724_s17 = scalar_lea.vmem %s723_s1, 64 }
  0x7c   : > { %v270_v22 = vsub.f32 %v261_v10, %v269_v14  ;;  %v271_v23 = vsub.f32 %v262_v11, %v269_v14  ;;  %v276_v24 = vsub.f32 %v261_v10, %v275_v15  ;;  %v277_v25 = vsub.f32 %v262_v11, %v275_v15  ;;  %p725_p0 = scmp.lt.s32.totalorder %s1037_s11, %s723_s1  ;;  %p726_p2 = scmp.lt.s32.totalorder %s724_s17, %s718_s8 }
  0x7d   : > { %v282_v26 = vsub.f32 %v261_v10, %v281_v16  ;;  %v283_v27 = vsub.f32 %v262_v11, %v281_v16  ;;  %v288_v28 = vsub.f32 %v261_v10, %v287_v17  ;;  %v289_v29 = vsub.f32 %v262_v11, %v287_v17  ;;  %p721_p10 = pneg %p720_p8 }
  0x7e   : > { %v296_v30 = vrot.slane %v271_v23, 7  ;;  %v308_v31 = vrot.slane %v276_v24, 1  ;;  %v342_v32 = vrot.slane %v264_v13, %v341_v6  ;;  %v348_v33 = vrot.slane %v264_v13, %v347_v7  ;;  %p727_p9 = por %p726_p2, %p725_p0 }
  0x7f   : > { %v319_v34 = vrot.slane %v282_v26, 2  ;;  %v320_v35 = vrot.slane %v283_v27, 1  ;;  %v331_v36 = vrot.slane %v288_v28, 3  ;;  %v332_v37 = vrot.slane %v289_v29, 2 }
  0x80   : > { %v298_v39 = vsel %vm297_vm0, %v296_v30, %v270_v22  ;;  %v309_v40 = vsel %vm297_vm0, %v277_v25, %v308_v31  ;;  %v354_v41 = vrot.slane %v264_v13, %v353_v8  ;;  %v360_v42 = vrot.slane %v264_v13, %v359_v9  ;;  %p728_p3 = pnand %p727_p9, %p721_p10 }
  0x81   : > { %v300_v43 = vmul.f32 %v298_v39, %v293_v18  ;;  %v311_v44 = vmul.f32 %v309_v40, %v305_v19  ;;  %v321_v45 = vsel %vm297_vm0, %v320_v35, %v319_v34  ;;  %v333_v46 = vsel %vm297_vm0, %v332_v37, %v331_v36 }
  0x82   : > { %v323_v47 = vmul.f32 %v321_v45, %v316_v20  ;;  %v335_v48 = vmul.f32 %v333_v46, %v328_v21  ;;  %v343_v49 = vmul.f32 %v342_v32, %v298_v39  ;;  %v349_v50 = vmul.f32 %v348_v33, %v309_v40 }
  0x83   : > { %v312_v51 = vadd.f32 %v311_v44, %v300_v43  ;;  %v355_v52 = vmul.f32 %v354_v41, %v321_v45  ;;  %v361_v53 = vmul.f32 %v360_v42, %v333_v46  ;;  %v368_v54 = vrot.slane %v265_v38, %v268_v2 }
  0x84   : > { %v350_v55 = vadd.f32 %v349_v50, %v343_v49  ;;  %v374_v56 = vrot.slane %v265_v38, %v1006_v3  ;;  %v380_v57 = vrot.slane %v265_v38, %v1009_v4  ;;  %v386_v58 = vrot.slane %v265_v38, %v1012_v5 }
  0x85   : > { %v324_v59 = vadd.f32 %v323_v47, %v312_v51  ;;  %v369_v60 = vmul.f32 %v368_v54, %v298_v39  ;;  %v394_v61 = vrot.slane %v265_v38, %v341_v6  ;;  %v400_v62 = vrot.slane %v265_v38, %v347_v7 }
  0x86   : > { %v356_v63 = vadd.f32 %v355_v52, %v350_v55  ;;  %v375_v0 = vmul.f32 %v374_v56, %v309_v40  ;;  %v381_v10 = vmul.f32 %v380_v57, %v321_v45  ;;  %v406_v14 = vrot.slane %v265_v38, %v353_v8 }
  0x87   : > { %v336_v11 = vadd.f32 %v335_v48, %v324_v59  ;;  %v395_v12 = vmul.f32 %v394_v61, %v298_v39  ;;  %v401_v13 = vmul.f32 %v400_v62, %v309_v40  ;;  %v387_v16 = vmul.f32 %v386_v58, %v333_v46 }
  0x88   : > { %v362_v15 = vadd.f32 %v361_v53, %v356_v63  ;;  %v376_v2 = vadd.f32 %v375_v0, %v369_v60  ;;  %v412_v3 = vrot.slane %v265_v38, %v359_v9  ;;  %v407_v17 = vmul.f32 %v406_v14, %v321_v45 }
  0x89   : > { %v337_v4 = vmul.f32 %v336_v11, %v298_v39  ;;  %v402_v5 = vadd.f32 %v401_v13, %v395_v12 }
  0x8a   : > { %v363_v18 = vmul.f32 %v362_v15, %v309_v40  ;;  %v382_v6 = vadd.f32 %v381_v10, %v376_v2  ;;  %v413_v7 = vmul.f32 %v412_v3, %v333_v46 }
  0x8b   : > { %v408_v19 = vadd.f32 %v407_v17, %v402_v5 }
  0x8c   : > { %v364_v20 = vadd.f32 %v363_v18, %v337_v4  ;;  %v388_v21 = vadd.f32 %v387_v16, %v382_v6 }
  0x8d   : > { %v414_v22 = vadd.f32 %v413_v7, %v408_v19 }
  0x8e   : > { %v389_v23 = vmul.f32 %v388_v21, %v321_v45 }
  0x8f   : > { %v415_v8 = vmul.f32 %v414_v22, %v333_v46 }
  0x90   : > { %v390_v24 = vadd.f32 %v389_v23, %v364_v20 }
  0x92   : > { %v416_v25 = vadd.f32 %v415_v8, %v390_v24 }
  0x94   : > { %v417_v26 = vmax.f32 %v416_v25, 0.0 }
  0x96   : > { %632 = vrsqrt.f32 %v417_v26  ;;  %vm420_vm1 = vcmp.eq.f32.partialorder %v417_v26, inf  ;;  %v423_v9 = vand.u32 2147483648, %v417_v26  ;;  %vm422_vm2 = vcmp.eq.f32.partialorder %v417_v26, 0.0 }
  0xa3   : > { %v633_v1 = vpop.eup %632 }
  0xa4   : > { %v419_v27 = vmul.f32 %v633_v1, %v417_v26 }
  0xa6   : > { %v421_v28 = vsel %vm420_vm1, %v417_v26, %v419_v27 }
  0xa7   : > { %v424_v29 = vsel %vm422_vm2, %v423_v9, %v421_v28 }
  0xa8   : > { %425 = vst [vmem:[%s260_s9] sm:$0x3] %v424_v29 }
  0xa9   : > { %731 = shalt.err (!%p728_p3)
}
  0xaa   : > { %s732_s10 = scalar_lea.hbm %s438_s7, 32  ;;  %s736_s29 = scalar_lea.hbm %s1080_s3, 64 }
  0xab   : > { %p733_p11 = scmp.ne.s32.totalorder %s438_s7, %s732_s10  ;;  %p737_p4 = scmp.lt.s32.totalorder %s438_s7, %s1080_s3 }
  0xac   : > { %p738_p1 = scmp.lt.s32.totalorder %s736_s29, %s732_s10 }
  0xad   : > { %p734_p12 = pnand %p733_p11, %p1097_p7 }
  0xae   : > { %p739_p5 = por %p738_p1, %p737_p4 }
  0xaf   : > { %p735_p6 = pneg %p734_p12 }
  0xb1   : > { %p740_p13 = pnand %p739_p5, %p735_p6 }
  0xb3   : > { %743 = shalt.err (!%p740_p13)
}
  0xb4   : > { %577 = dma.vmem_to_hbm [thread:$0]  (%p1097_p7), %s1037_s11, 32, %s438_s7, %s427_s0  }
  0xb5 PF: > { %s452_s21 = sand.u32 1, %s774_s12   ;;  %p1098_p8 = scmp.ne.s32.totalorder %s1088_s24, 0 }
  0xb6   : > { %p1099_p10 = scmp.ge.s32.totalorder %s786_s15, 2  ;;  %s453_s20 = scalar_lea.sflag [#allocation4], %s452_s21 }
  0xb8   : > { %p590_p0 = pnand %p1099_p10, %p1098_p8 }
  0xba   : > { %p591_p2 = pneg %p590_p0 }
  0xbc   : > { %769 = dma.done.wait (%p591_p2), %s453_s20, 32  }
  0xbd   : > { %771 = vsyncadd (%p591_p2), %s453_s20, 4294967264  ;;  %s1100_s5 = sld [smem:[#allocation12_spill]]  ;;  %p19_p9 = scmp.ge.s32.totalorder %s842_s18, 4  }
  0xbe   : > { %s1101_s12 = smov %s778_s13  ;;  %s1102_s13 = smov %s782_s14 }
  0xbf   : > { %s1104_s15 = smov %s842_s18  ;;  %21 = sbr.rel (!%p19_p9) target bundleno = 10 (0xa), region = 101 }
  0xc3   : > { %s1103_s14 = smov %s1100_s5 }
  0xc4   :  { %458 = vsyncpa [#allocation3], 1 }
  0xc5   :  { %460 = vsyncpa [#allocation3 + $0x1], 1 }
  0xc6   :  { %461 = vsyncpa [#allocation6], 1 }
  0xc7   :  { %463 = vsyncpa [#allocation6 + $0x1], 1 }
  0xc8   :  { %464 = vsyncpa [#allocation4], 1 }
  0xc9   :  { %466 = vsyncpa [#allocation4 + $0x1], 1 }

</bundles_post_ra>
